<compile_context>
chip_gen: v7x
topology: tpu7x:2x2x1
jax: 0.10.0
libtpu: 0.0.40
codegen_flags: <defaults>
</compile_context>

<pallas_src>
import jax
import jax.numpy as jnp
from jax.experimental import pallas as pl
from jax.experimental.pallas import tpu as pltpu


def _round_up(x, m):
    return (x + m - 1) // m * m


def _cdiv(a, b):
    return (a + b - 1) // b


def _choose_tiles(B, S, H, itemsize, budget_bytes=24 << 20):
    """Pick (tb, ts, B_pad, S_pad) so the double-buffered emb+mask DMA fits.

    Prefers zero padding (tb == B, ts == S single block); otherwise tiles the
    seq axis (tb == B) and only tiles/pads the batch axis when unavoidable.
    """
    per_bs = 2 * (H * itemsize + 4)            # emb + mask, 2 pipeline buffers
    cap = max(budget_bytes // per_bs, 64)      # max tb * ts elements

    if B * S <= cap:                           # whole thing in one block pair
        return B, S, B, S

    if 8 * B <= cap:                           # tile sequence only
        tb, B_pad = B, B
    else:                                      # must tile batch: tb mult of 8
        tb = max(8, min(64, (cap // 8) // 8 * 8))
        B_pad = _round_up(B, tb)

    ts_max = max(8, min(512, (cap // tb) // 8 * 8))
    S8 = _round_up(S, 8)
    n_s = _cdiv(S8, ts_max)                    # balanced seq tiles → tiny pad
    ts = _round_up(_cdiv(S8, n_s), 8)
    return tb, ts, B_pad, n_s * ts


def _pool_project_kernel(emb_ref, mask_ref, w_ref, b_ref, out_ref,
                         sum_acc, mask_acc):
    """Masked sum over a seq tile (accumulated), projected at the last tile.

    emb_ref  : [tb, ts, H]  f32/bf16  token embeddings
    mask_ref : [tb, ts, 1]  f32       attention mask
    w_ref    : [H, E]       f32       contrastive_head.weight (transposed)
    b_ref    : [1, E]       f32       contrastive_head.bias
    out_ref  : [tb, E]      f32
    sum_acc  : [tb, H]      f32 scratch (sum of masked embeddings over S)
    mask_acc : [tb, 1]      f32 scratch (sum of mask over S)
    """
    s = pl.program_id(1)

    @pl.when(s == 0)
    def _():
        sum_acc[...] = jnp.zeros_like(sum_acc)
        mask_acc[...] = jnp.zeros_like(mask_acc)

    # Explicit f32 accumulation (v5e has no bf16 VPU).
    emb = emb_ref[...].astype(jnp.float32)     # [tb, ts, H]
    mask = mask_ref[...]                       # [tb, ts, 1] (lane-splat over H)

    sum_acc[...] += jnp.sum(emb * mask, axis=1)    # [tb, H]
    mask_acc[...] += jnp.sum(mask, axis=1)         # [tb, 1]

    @pl.when(s == pl.num_programs(1) - 1)
    def _():
        # torch.clamp(input_mask_expanded.sum(1), min=1e-9)
        denom = jnp.maximum(mask_acc[...], 1e-9)   # [tb, 1]
        # Project the raw sums on the MXU, then normalize (exact by linearity).
        proj = jnp.dot(sum_acc[...], w_ref[...],
                       preferred_element_type=jnp.float32)      # [tb, E]
        inv = pl.reciprocal(denom, approx=False)                # exact
        out_ref[...] = (proj * inv + b_ref[...]).astype(out_ref.dtype)


def pool_and_project(token_embeddings, attention_mask, weight_t, bias):
    """[B,S,H], [B,S], [H,E], [E] -> [B,E]  (mean_pooling + contrastive_head)."""
    B, S, H = token_embeddings.shape
    H2, E = weight_t.shape
    assert H2 == H

    itemsize = jnp.dtype(token_embeddings.dtype).itemsize
    tb, ts, B_pad, S_pad = _choose_tiles(B, S, H, itemsize)

    emb = token_embeddings
    mask = attention_mask.astype(jnp.float32)
    if B_pad != B or S_pad != S:
        # Zero mask on padded rows/positions => padding contributes nothing.
        emb = jnp.pad(emb, ((0, B_pad - B), (0, S_pad - S), (0, 0)))
        mask = jnp.pad(mask, ((0, B_pad - B), (0, S_pad - S)))
    # Mask shaped [B, S, 1]: S on sublanes (matches emb), broadcast along lanes.
    mask3 = mask.reshape(B_pad, S_pad, 1)
    w = weight_t.astype(jnp.float32)
    bias2d = bias.reshape(1, E).astype(jnp.float32)

    grid = (B_pad // tb, S_pad // ts)

    # Rough VMEM budget: double-buffered inputs + params + output + scratch.
    vmem_estimate = (2 * tb * ts * (H * itemsize + 4)
                     + 2 * (H * E + E) * 4
                     + 2 * tb * E * 4
                     + tb * (H + 128) * 4)
    vmem_limit = int(min(max(2 * vmem_estimate, 32 << 20), 64 << 20))

    out_padded = pl.pallas_call(
        _pool_project_kernel,
        out_shape=jax.ShapeDtypeStruct((B_pad, E), jnp.float32),
        grid_spec=pltpu.PrefetchScalarGridSpec(
            num_scalar_prefetch=0,
            grid=grid,
            in_specs=[
                pl.BlockSpec((tb, ts, H), lambda b, s: (b, s, 0)),
                pl.BlockSpec((tb, ts, 1), lambda b, s: (b, s, 0)),
                pl.BlockSpec((H, E), lambda b, s: (0, 0)),
                pl.BlockSpec((1, E), lambda b, s: (0, 0)),
            ],
            out_specs=pl.BlockSpec((tb, E), lambda b, s: (b, 0)),
            scratch_shapes=[
                pltpu.VMEM((tb, H), jnp.float32),
                pltpu.VMEM((tb, 1), jnp.float32),
            ],
        ),
        compiler_params=pltpu.CompilerParams(
            dimension_semantics=("parallel", "arbitrary"),
            vmem_limit_bytes=vmem_limit,
        ),
    )(emb, mask3, w, bias2d)

    if B_pad != B:
        out_padded = out_padded[:B]
    return out_padded


def nli_forward(input_token_emb, input_mask, desc_token_emb, desc_mask,
                weight_t, bias, num_classes):
    """Eval-mode NLIModel.forward semantics (post-BERT).

    Returns (cls_embeddings [B,E], desc_embeddings [B*C,E], out_classes [B*C]).
    """
    B = input_token_emb.shape[0]
    C = desc_token_emb.shape[0]

    # cls_embeddings = contrastive_head(mean_pooling(bert_output, mask))
    cls_embeddings = pool_and_project(input_token_emb, input_mask,
                                      weight_t, bias)
    # self.desc_embeddings = contrastive_head(mean_pooling(desc_output, desc_mask))
    desc_embeddings_all = pool_and_project(desc_token_emb, desc_mask,
                                           weight_t, bias)

    # Eval path: top_k = arange(num_classes) repeated per batch row; the
    # python gather/cat loop is just a tiled broadcast of the desc embeddings.
    desc_embeddings = jnp.tile(desc_embeddings_all, (B, 1))            # [B*C, E]
    out_classes = jnp.tile(jnp.arange(num_classes, dtype=jnp.float32), (B,))

    return cls_embeddings, desc_embeddings, out_classes


if __name__ == "__main__":
    # Small shapes consistent with the forward pass:
    #   batch B=2, seq S=8, bert hidden H=32, embedding_dim E=128,
    #   num_classes C=4, description seq Sd=16 (sources need NOT share a
    #   sequence length — each gets its own pallas_call, no concat/pad copy).
    B, S, H, E = 2, 8, 32, 128
    C, Sd = 4, 16

    key = jax.random.PRNGKey(0)
    k1, k2, k3, k4, k5, k6 = jax.random.split(key, 6)

    # Synthetic "BERT outputs" (token embeddings) and attention masks.
    # (bf16 embeddings are also supported; the kernel accumulates in f32.)
    input_token_emb = jax.random.normal(k1, (B, S, H), dtype=jnp.float32)
    input_mask = (jax.random.uniform(k2, (B, S)) > 0.3).astype(jnp.float32)
    desc_token_emb = jax.random.normal(k3, (C, Sd, H), dtype=jnp.float32)
    desc_mask = (jax.random.uniform(k4, (C, Sd)) > 0.3).astype(jnp.float32)

    # contrastive_head = nn.Linear(H, E); weight stored transposed [H, E].
    weight_t = jax.random.normal(k5, (H, E), dtype=jnp.float32) * 0.02
    bias = jax.random.normal(k6, (E,), dtype=jnp.float32) * 0.02

    nli_forward_jit = jax.jit(nli_forward, static_argnames=("num_classes",))
    cls_emb, desc_emb, out_classes = nli_forward_jit(
        input_token_emb, input_mask, desc_token_emb, desc_mask,
        weight_t, bias, num_classes=C)

    jax.block_until_ready((cls_emb, desc_emb, out_classes))

    # Pure-JAX reference check of the pooling + projection path.
    def ref_pool_project(emb, mask, wt, b):
        summed = jnp.sum(emb * mask[:, :, None], axis=1)
        denom = jnp.maximum(jnp.sum(mask, axis=1, keepdims=True), 1e-9)
        return (summed / denom) @ wt + b

    ref_cls = ref_pool_project(input_token_emb, input_mask, weight_t, bias)
    ref_desc_all = ref_pool_project(desc_token_emb, desc_mask, weight_t, bias)
    ref_desc = jnp.tile(ref_desc_all, (B, 1))
    ref_classes = jnp.tile(jnp.arange(C, dtype=jnp.float32), (B,))

    assert cls_emb.shape == (B, E)
    assert desc_emb.shape == (B * C, E)
    assert out_classes.shape == (B * C,)
    assert jnp.allclose(cls_emb, ref_cls, atol=1e-5, rtol=1e-4)
    assert jnp.allclose(desc_emb, ref_desc, atol=1e-5, rtol=1e-4)
    assert jnp.array_equal(out_classes, ref_classes)

    # TODO(synk): BERT encoder, tokenizer, LoRA adapters, training-mode token
    # masking/dropout and CSV description loading are external to this kernel.
    print("KERNEL_OK")
</pallas_src>

<mosaic_0001>
module attributes {stable_mosaic.version = 11 : i64} {
  func.func @_pool_project_kernel(%arg0: i32, %arg1: i32, %arg2: memref<4x16x32xf32, #tpu.memory_space<vmem>>, %arg3: memref<4x16x1xf32, #tpu.memory_space<vmem>>, %arg4: memref<32x128xf32, #tpu.memory_space<vmem>>, %arg5: memref<1x128xf32, #tpu.memory_space<vmem>>, %arg6: memref<4x128xf32, #tpu.memory_space<vmem>>, %arg7: memref<4x32xf32, #tpu.memory_space<vmem>>, %arg8: memref<4x1xf32, #tpu.memory_space<vmem>>) attributes {dimension_semantics = [#tpu.dimension_semantics<parallel>, #tpu.dimension_semantics<arbitrary>], iteration_bounds = array<i64: 1, 1>, scalar_prefetch = 0 : i64, scratch_operands = 2 : i64, tpu.core_type = #tpu.core_type<tc>, window_params = [{transform_indices = @transform_0, window_bounds = array<i64: 4, 16, 32>}, {transform_indices = @transform_1, window_bounds = array<i64: 4, 16, 1>}, {pipeline_mode = #tpu.pipeline_mode<synchronous>, transform_indices = @transform_2, window_bounds = array<i64: 32, 128>}, {pipeline_mode = #tpu.pipeline_mode<synchronous>, transform_indices = @transform_3, window_bounds = array<i64: 1, 128>}, {transform_indices = @transform_4, window_bounds = array<i64: 4, 128>}]} {
    %c0_i32 = arith.constant 0 : i32
    %0 = arith.cmpi eq, %arg1, %c0_i32 : i32
    %1 = arith.extui %0 : i1 to i32
    %c0_i32_0 = arith.constant 0 : i32
    %2 = arith.cmpi ne, %1, %c0_i32_0 : i32
    scf.if %2 {
      %cst_17 = arith.constant 0.000000e+00 : f32
      %18 = vector.broadcast %cst_17 : f32 to vector<4x32xf32>
      %c0_18 = arith.constant 0 : index
      %c0_19 = arith.constant 0 : index
      %19 = vector.load %arg7[%c0_18, %c0_19] : memref<4x32xf32, #tpu.memory_space<vmem>>, vector<4x32xf32>
      tpu.vector_store %arg7[%c0_18, %c0_19], %18 {strides = array<i32>} : memref<4x32xf32, #tpu.memory_space<vmem>>, vector<4x32xf32>,
      %cst_20 = arith.constant 0.000000e+00 : f32
      %20 = vector.broadcast %cst_20 : f32 to vector<4x1xf32>
      %c0_21 = arith.constant 0 : index
      %c0_22 = arith.constant 0 : index
      %21 = vector.load %arg8[%c0_21, %c0_22] : memref<4x1xf32, #tpu.memory_space<vmem>>, vector<4x1xf32>
      tpu.vector_store %arg8[%c0_21, %c0_22], %20 {strides = array<i32>} : memref<4x1xf32, #tpu.memory_space<vmem>>, vector<4x1xf32>,
    } else {
    }
    %c0 = arith.constant 0 : index
    %c0_1 = arith.constant 0 : index
    %c0_2 = arith.constant 0 : index
    %3 = vector.load %arg2[%c0, %c0_1, %c0_2] : memref<4x16x32xf32, #tpu.memory_space<vmem>>, vector<4x16x32xf32>
    %c0_3 = arith.constant 0 : index
    %c0_4 = arith.constant 0 : index
    %c0_5 = arith.constant 0 : index
    %4 = vector.load %arg3[%c0_3, %c0_4, %c0_5] : memref<4x16x1xf32, #tpu.memory_space<vmem>>, vector<4x16x1xf32>
    %c0_6 = arith.constant 0 : index
    %c0_7 = arith.constant 0 : index
    %5 = vector.load %arg7[%c0_6, %c0_7] : memref<4x32xf32, #tpu.memory_space<vmem>>, vector<4x32xf32>
    %6 = vector.broadcast %4 : vector<4x16x1xf32> to vector<4x16x32xf32>
    %7 = arith.mulf %3, %6 : vector<4x16x32xf32>
    %cst = arith.constant dense<0.000000e+00> : vector<4x32xf32>
    %8 = vector.multi_reduction <add>, %7, %cst [1] : vector<4x16x32xf32> to vector<4x32xf32>
    %9 = arith.addf %5, %8 : vector<4x32xf32>
    %c0_8 = arith.constant 0 : index
    %c0_9 = arith.constant 0 : index
    %10 = vector.load %arg7[%c0_8, %c0_9] : memref<4x32xf32, #tpu.memory_space<vmem>>, vector<4x32xf32>
    tpu.vector_store %arg7[%c0_8, %c0_9], %9 {strides = array<i32>} : memref<4x32xf32, #tpu.memory_space<vmem>>, vector<4x32xf32>,
    %c0_10 = arith.constant 0 : index
    %c0_11 = arith.constant 0 : index
    %11 = vector.load %arg8[%c0_10, %c0_11] : memref<4x1xf32, #tpu.memory_space<vmem>>, vector<4x1xf32>
    %cst_12 = arith.constant dense<0.000000e+00> : vector<4x1xf32>
    %12 = vector.multi_reduction <add>, %4, %cst_12 [1] : vector<4x16x1xf32> to vector<4x1xf32>
    %13 = arith.addf %11, %12 : vector<4x1xf32>
    %c0_13 = arith.constant 0 : index
    %c0_14 = arith.constant 0 : index
    %14 = vector.load %arg8[%c0_13, %c0_14] : memref<4x1xf32, #tpu.memory_space<vmem>>, vector<4x1xf32>
    tpu.vector_store %arg8[%c0_13, %c0_14], %13 {strides = array<i32>} : memref<4x1xf32, #tpu.memory_space<vmem>>, vector<4x1xf32>,
    %c0_i32_15 = arith.constant 0 : i32
    %15 = arith.cmpi eq, %arg1, %c0_i32_15 : i32
    %16 = arith.extui %15 : i1 to i32
    %c0_i32_16 = arith.constant 0 : i32
    %17 = arith.cmpi ne, %16, %c0_i32_16 : i32
    scf.if %17 {
      %c0_17 = arith.constant 0 : index
      %c0_18 = arith.constant 0 : index
      %18 = vector.load %arg8[%c0_17, %c0_18] : memref<4x1xf32, #tpu.memory_space<vmem>>, vector<4x1xf32>
      %cst_19 = arith.constant 9.99999971E-10 : f32
      %19 = vector.broadcast %cst_19 : f32 to vector<4x1xf32>
      %20 = arith.maximumf %18, %19 : vector<4x1xf32>
      %c0_20 = arith.constant 0 : index
      %c0_21 = arith.constant 0 : index
      %21 = vector.load %arg7[%c0_20, %c0_21] : memref<4x32xf32, #tpu.memory_space<vmem>>, vector<4x32xf32>
      %c0_22 = arith.constant 0 : index
      %c0_23 = arith.constant 0 : index
      %22 = vector.load %arg4[%c0_22, %c0_23] : memref<32x128xf32, #tpu.memory_space<vmem>>, vector<32x128xf32>
      %cst_24 = arith.constant dense<0.000000e+00> : vector<4x128xf32>
      %23 = tpu.matmul %21, %22, %cst_24 {dimension_numbers = #tpu.dot_dimension_numbers<[1], [0], [0], [1], [0, 0, 1, 1], [], []>} : vector<4x32xf32>, vector<32x128xf32>, vector<4x128xf32> -> vector<4x128xf32>
      %24 = tpu.reciprocal %20 : vector<4x1xf32> -> vector<4x1xf32>
      %25 = vector.broadcast %24 : vector<4x1xf32> to vector<4x128xf32>
      %26 = arith.mulf %23, %25 : vector<4x128xf32>
      %c0_25 = arith.constant 0 : index
      %c0_26 = arith.constant 0 : index
      %27 = vector.load %arg5[%c0_25, %c0_26] : memref<1x128xf32, #tpu.memory_space<vmem>>, vector<1x128xf32>
      %28 = vector.broadcast %27 : vector<1x128xf32> to vector<4x128xf32>
      %29 = arith.addf %26, %28 : vector<4x128xf32>
      %c0_27 = arith.constant 0 : index
      %c0_28 = arith.constant 0 : index
      %30 = vector.load %arg6[%c0_27, %c0_28] : memref<4x128xf32, #tpu.memory_space<vmem>>, vector<4x128xf32>
      tpu.vector_store %arg6[%c0_27, %c0_28], %29 {strides = array<i32>} : memref<4x128xf32, #tpu.memory_space<vmem>>, vector<4x128xf32>,
    } else {
    }
    return
  }
  func.func @transform_0(%arg0: i32, %arg1: i32) -> (i32, i32, i32) {
    %c0_i32 = arith.constant 0 : i32
    %c0_i32_0 = arith.constant 0 : i32
    return %arg0, %arg1, %c0_i32 : i32, i32, i32
  }
  func.func @transform_1(%arg0: i32, %arg1: i32) -> (i32, i32, i32) {
    %c0_i32 = arith.constant 0 : i32
    %c0_i32_0 = arith.constant 0 : i32
    return %arg0, %arg1, %c0_i32 : i32, i32, i32
  }
  func.func @transform_2(%arg0: i32, %arg1: i32) -> (i32, i32) {
    %c0_i32 = arith.constant 0 : i32
    %c0_i32_0 = arith.constant 0 : i32
    %c0_i32_1 = arith.constant 0 : i32
    return %c0_i32, %c0_i32_0 : i32, i32
  }
  func.func @transform_3(%arg0: i32, %arg1: i32) -> (i32, i32) {
    %c0_i32 = arith.constant 0 : i32
    %c0_i32_0 = arith.constant 0 : i32
    %c0_i32_1 = arith.constant 0 : i32
    return %c0_i32, %c0_i32_0 : i32, i32
  }
  func.func @transform_4(%arg0: i32, %arg1: i32) -> (i32, i32) {
    %c0_i32 = arith.constant 0 : i32
    %c0_i32_0 = arith.constant 0 : i32
    return %arg0, %c0_i32 : i32, i32
  }
}

module attributes {stable_mosaic.version = 11 : i64} {
  func.func @_pool_project_kernel(%arg0: i32, %arg1: i32, %arg2: memref<2x8x32xf32, #tpu.memory_space<vmem>>, %arg3: memref<2x8x1xf32, #tpu.memory_space<vmem>>, %arg4: memref<32x128xf32, #tpu.memory_space<vmem>>, %arg5: memref<1x128xf32, #tpu.memory_space<vmem>>, %arg6: memref<2x128xf32, #tpu.memory_space<vmem>>, %arg7: memref<2x32xf32, #tpu.memory_space<vmem>>, %arg8: memref<2x1xf32, #tpu.memory_space<vmem>>) attributes {dimension_semantics = [#tpu.dimension_semantics<parallel>, #tpu.dimension_semantics<arbitrary>], iteration_bounds = array<i64: 1, 1>, scalar_prefetch = 0 : i64, scratch_operands = 2 : i64, tpu.core_type = #tpu.core_type<tc>, window_params = [{transform_indices = @transform_0, window_bounds = array<i64: 2, 8, 32>}, {transform_indices = @transform_1, window_bounds = array<i64: 2, 8, 1>}, {pipeline_mode = #tpu.pipeline_mode<synchronous>, transform_indices = @transform_2, window_bounds = array<i64: 32, 128>}, {pipeline_mode = #tpu.pipeline_mode<synchronous>, transform_indices = @transform_3, window_bounds = array<i64: 1, 128>}, {transform_indices = @transform_4, window_bounds = array<i64: 2, 128>}]} {
    %c0_i32 = arith.constant 0 : i32
    %0 = arith.cmpi eq, %arg1, %c0_i32 : i32
    %1 = arith.extui %0 : i1 to i32
    %c0_i32_0 = arith.constant 0 : i32
    %2 = arith.cmpi ne, %1, %c0_i32_0 : i32
    scf.if %2 {
      %cst_17 = arith.constant 0.000000e+00 : f32
      %18 = vector.broadcast %cst_17 : f32 to vector<2x32xf32>
      %c0_18 = arith.constant 0 : index
      %c0_19 = arith.constant 0 : index
      %19 = vector.load %arg7[%c0_18, %c0_19] : memref<2x32xf32, #tpu.memory_space<vmem>>, vector<2x32xf32>
      tpu.vector_store %arg7[%c0_18, %c0_19], %18 {strides = array<i32>} : memref<2x32xf32, #tpu.memory_space<vmem>>, vector<2x32xf32>,
      %cst_20 = arith.constant 0.000000e+00 : f32
      %20 = vector.broadcast %cst_20 : f32 to vector<2x1xf32>
      %c0_21 = arith.constant 0 : index
      %c0_22 = arith.constant 0 : index
      %21 = vector.load %arg8[%c0_21, %c0_22] : memref<2x1xf32, #tpu.memory_space<vmem>>, vector<2x1xf32>
      tpu.vector_store %arg8[%c0_21, %c0_22], %20 {strides = array<i32>} : memref<2x1xf32, #tpu.memory_space<vmem>>, vector<2x1xf32>,
    } else {
    }
    %c0 = arith.constant 0 : index
    %c0_1 = arith.constant 0 : index
    %c0_2 = arith.constant 0 : index
    %3 = vector.load %arg2[%c0, %c0_1, %c0_2] : memref<2x8x32xf32, #tpu.memory_space<vmem>>, vector<2x8x32xf32>
    %c0_3 = arith.constant 0 : index
    %c0_4 = arith.constant 0 : index
    %c0_5 = arith.constant 0 : index
    %4 = vector.load %arg3[%c0_3, %c0_4, %c0_5] : memref<2x8x1xf32, #tpu.memory_space<vmem>>, vector<2x8x1xf32>
    %c0_6 = arith.constant 0 : index
    %c0_7 = arith.constant 0 : index
    %5 = vector.load %arg7[%c0_6, %c0_7] : memref<2x32xf32, #tpu.memory_space<vmem>>, vector<2x32xf32>
    %6 = vector.broadcast %4 : vector<2x8x1xf32> to vector<2x8x32xf32>
    %7 = arith.mulf %3, %6 : vector<2x8x32xf32>
    %cst = arith.constant dense<0.000000e+00> : vector<2x32xf32>
    %8 = vector.multi_reduction <add>, %7, %cst [1] : vector<2x8x32xf32> to vector<2x32xf32>
    %9 = arith.addf %5, %8 : vector<2x32xf32>
    %c0_8 = arith.constant 0 : index
    %c0_9 = arith.constant 0 : index
    %10 = vector.load %arg7[%c0_8, %c0_9] : memref<2x32xf32, #tpu.memory_space<vmem>>, vector<2x32xf32>
    tpu.vector_store %arg7[%c0_8, %c0_9], %9 {strides = array<i32>} : memref<2x32xf32, #tpu.memory_space<vmem>>, vector<2x32xf32>,
    %c0_10 = arith.constant 0 : index
    %c0_11 = arith.constant 0 : index
    %11 = vector.load %arg8[%c0_10, %c0_11] : memref<2x1xf32, #tpu.memory_space<vmem>>, vector<2x1xf32>
    %cst_12 = arith.constant dense<0.000000e+00> : vector<2x1xf32>
    %12 = vector.multi_reduction <add>, %4, %cst_12 [1] : vector<2x8x1xf32> to vector<2x1xf32>
    %13 = arith.addf %11, %12 : vector<2x1xf32>
    %c0_13 = arith.constant 0 : index
    %c0_14 = arith.constant 0 : index
    %14 = vector.load %arg8[%c0_13, %c0_14] : memref<2x1xf32, #tpu.memory_space<vmem>>, vector<2x1xf32>
    tpu.vector_store %arg8[%c0_13, %c0_14], %13 {strides = array<i32>} : memref<2x1xf32, #tpu.memory_space<vmem>>, vector<2x1xf32>,
    %c0_i32_15 = arith.constant 0 : i32
    %15 = arith.cmpi eq, %arg1, %c0_i32_15 : i32
    %16 = arith.extui %15 : i1 to i32
    %c0_i32_16 = arith.constant 0 : i32
    %17 = arith.cmpi ne, %16, %c0_i32_16 : i32
    scf.if %17 {
      %c0_17 = arith.constant 0 : index
      %c0_18 = arith.constant 0 : index
      %18 = vector.load %arg8[%c0_17, %c0_18] : memref<2x1xf32, #tpu.memory_space<vmem>>, vector<2x1xf32>
      %cst_19 = arith.constant 9.99999971E-10 : f32
      %19 = vector.broadcast %cst_19 : f32 to vector<2x1xf32>
      %20 = arith.maximumf %18, %19 : vector<2x1xf32>
      %c0_20 = arith.constant 0 : index
      %c0_21 = arith.constant 0 : index
      %21 = vector.load %arg7[%c0_20, %c0_21] : memref<2x32xf32, #tpu.memory_space<vmem>>, vector<2x32xf32>
      %c0_22 = arith.constant 0 : index
      %c0_23 = arith.constant 0 : index
      %22 = vector.load %arg4[%c0_22, %c0_23] : memref<32x128xf32, #tpu.memory_space<vmem>>, vector<32x128xf32>
      %cst_24 = arith.constant dense<0.000000e+00> : vector<2x128xf32>
      %23 = tpu.matmul %21, %22, %cst_24 {dimension_numbers = #tpu.dot_dimension_numbers<[1], [0], [0], [1], [0, 0, 1, 1], [], []>} : vector<2x32xf32>, vector<32x128xf32>, vector<2x128xf32> -> vector<2x128xf32>
      %24 = tpu.reciprocal %20 : vector<2x1xf32> -> vector<2x1xf32>
      %25 = vector.broadcast %24 : vector<2x1xf32> to vector<2x128xf32>
      %26 = arith.mulf %23, %25 : vector<2x128xf32>
      %c0_25 = arith.constant 0 : index
      %c0_26 = arith.constant 0 : index
      %27 = vector.load %arg5[%c0_25, %c0_26] : memref<1x128xf32, #tpu.memory_space<vmem>>, vector<1x128xf32>
      %28 = vector.broadcast %27 : vector<1x128xf32> to vector<2x128xf32>
      %29 = arith.addf %26, %28 : vector<2x128xf32>
      %c0_27 = arith.constant 0 : index
      %c0_28 = arith.constant 0 : index
      %30 = vector.load %arg6[%c0_27, %c0_28] : memref<2x128xf32, #tpu.memory_space<vmem>>, vector<2x128xf32>
      tpu.vector_store %arg6[%c0_27, %c0_28], %29 {strides = array<i32>} : memref<2x128xf32, #tpu.memory_space<vmem>>, vector<2x128xf32>,
    } else {
    }
    return
  }
  func.func @transform_0(%arg0: i32, %arg1: i32) -> (i32, i32, i32) {
    %c0_i32 = arith.constant 0 : i32
    %c0_i32_0 = arith.constant 0 : i32
    return %arg0, %arg1, %c0_i32 : i32, i32, i32
  }
  func.func @transform_1(%arg0: i32, %arg1: i32) -> (i32, i32, i32) {
    %c0_i32 = arith.constant 0 : i32
    %c0_i32_0 = arith.constant 0 : i32
    return %arg0, %arg1, %c0_i32 : i32, i32, i32
  }
  func.func @transform_2(%arg0: i32, %arg1: i32) -> (i32, i32) {
    %c0_i32 = arith.constant 0 : i32
    %c0_i32_0 = arith.constant 0 : i32
    %c0_i32_1 = arith.constant 0 : i32
    return %c0_i32, %c0_i32_0 : i32, i32
  }
  func.func @transform_3(%arg0: i32, %arg1: i32) -> (i32, i32) {
    %c0_i32 = arith.constant 0 : i32
    %c0_i32_0 = arith.constant 0 : i32
    %c0_i32_1 = arith.constant 0 : i32
    return %c0_i32, %c0_i32_0 : i32, i32
  }
  func.func @transform_4(%arg0: i32, %arg1: i32) -> (i32, i32) {
    %c0_i32 = arith.constant 0 : i32
    %c0_i32_0 = arith.constant 0 : i32
    return %arg0, %c0_i32 : i32, i32
  }
}

</mosaic_0001>

<bundles_post_ra>
// kernel: tile.19
= control target key start
LH: loop header
LB: loop body
LE: loop exit
PB: predicated region body
PF: predicated region fallthrough
CT: control target
= control target key end

     0   :  { %s85_s0 = inlined_call_operand.vmem [shape: f32[2,4], index: 0, kind: input, shape index: {}]   ;;  %s86_s1 = inlined_call_operand.hbm [shape: f32[8], index: 1, kind: output, shape index: {}]  }
   0x1   :  { %v5_v0 = vld [vmem:[%s85_s0] sm:$0x3] }
   0x2   :  { %6 = vst [vmem:[#allocation3] sm:$0x3] %v5_v0 }
   0x3   :  { %2 = vsyncpa [#allocation1], 0  ;;  %vm8_vm0 = vcmask 31744   ;;  %s58_s0 = smov 4   ;;  %vm14_vm1 = vcmask 64544   ;;  %s59_s8 = smov [#allocation0]  }
   0x4   :  { %s26_s9 = sshll.u32 %s59_s8, 4  ;;  %s27_s9 = int_to_ptr.vmem [resolvable:$true] %s26_s9 }
   0x5   :  { %s34_s10 = scalar_lea.vmem %s27_s9, 16  ;;  %s38_s11 = scalar_lea.vmem %s27_s9, 32 }
   0x6   :  { %p35_p0 = scmp.ne.s32.totalorder %s27_s9, %s34_s10  ;;  %p39_p1 = scmp.lt.s32.totalorder %s27_s9, %s27_s9 }
   0x7   :  { %p40_p2 = scmp.lt.s32.totalorder %s38_s11, %s34_s10 }
   0x9   :  { %v11_v1 = vld [vmem:[#allocation3 + $0x1] sm:$0x1]   ;;  %v7_v2 = vld [vmem:[#allocation3] sm:$0x1]   ;;  %p41_p3 = por %p40_p2, %p39_p1 }
   0xa   :  { %12 = vrot.lane.b32.xlu0 %v11_v1, %s58_s0  ;;  %9 = vst.msk [vmem:[#allocation2] sm:$0x1] %vm8_vm0, %v7_v2  }
   0xb   :  { %p42_p4 = pnand %p41_p3, %p35_p0 }
  0x7c   :  { %v13_v3 = vpop.permute.xlu0 %12  }
  0x7d   :  { %15 = vst.msk [vmem:[#allocation2] sm:$0x1] %vm14_vm1, %v13_v3  }
  0x84   :  { %v19_v4 = vld [vmem:[#allocation2] sm:$0x1] }
  0x85   :  { %21 = vst [vmem:[#allocation0] sm:$0x1] %v19_v4 }
  0x86   :  { %45 = shalt.err (!%p42_p4)
}
  0x87   :  { %s46_s14 = scalar_lea.hbm %s86_s1, 16 }
  0x88   :  { %p47_p5 = scmp.ne.s32.totalorder %s86_s1, %s46_s14  ;;  %p50_p6 = scmp.lt.u32.totalorder %s46_s14, %s86_s1 }
  0x8a   :  { %p52_p7 = pnand %p50_p6, %p47_p5 }
  0x8c   :  { %55 = shalt.err (!%p52_p7)
}
  0x8d   :  { %29 = dma.vmem_to_hbm [thread:$0]  %s27_s9, 16, %s86_s1, [#allocation1]  }
  0x8e   :  { %56 = dma.done.wait [#allocation1], 16  }
  0x8f   :  { %57 = vsyncadd [#allocation1], 4294967280 }
  0x90   :  { %31 = vsyncpa [#allocation1], 1 }

// kernel: nli_forward.3
= control target key start
LH: loop header
LB: loop body
LE: loop exit
PB: predicated region body
PF: predicated region fallthrough
CT: control target
= control target key end

     0   :  { %9 = vsyncpa [#allocation5], 0  ;;  %s367_s15 = smov [#allocation4]   ;;  %s483_s0 = inlined_call_operand.hbm [shape: f32[4,16,32], index: 0, kind: input, shape index: {}]   ;;  %s484_s1 = inlined_call_operand.vmem [shape: f32[4,16,1], index: 1, kind: input, shape index: {}]   ;;  %s485_s2 = inlined_call_operand.vmem [shape: f32[32,128], index: 2, kind: input, shape index: {}]   ;;  %s486_s3 = inlined_call_operand.vmem [shape: f32[1,128], index: 3, kind: input, shape index: {}]   ;;  %s487_s4 = inlined_call_operand.vmem [shape: f32[4,128], index: 4, kind: output, shape index: {}]  }
   0x1   :  { %s15_s16 = sshll.u32 %s367_s15, 4  ;;  %s343_s19 = scalar_lea.hbm %s483_s0, 1024  ;;  %s16_s16 = int_to_ptr.vmem [resolvable:$true] %s15_s16 }
   0x2   :  { %p344_p0 = scmp.ne.s32.totalorder %s483_s0, %s343_s19  ;;  %p347_p1 = scmp.lt.u32.totalorder %s343_s19, %s483_s0 }
   0x4   :  { %p349_p2 = pnand %p347_p1, %p344_p0 }
   0x6   :  { %352 = shalt.err (!%p349_p2)
}
   0x7   :  { %s353_s24 = scalar_lea.vmem %s16_s16, 1024  ;;  %p358_p4 = scmp.lt.s32.totalorder %s16_s16, %s16_s16 }
   0x8   :  { %p354_p3 = scmp.ne.s32.totalorder %s16_s16, %s353_s24  ;;  %p359_p5 = scmp.lt.s32.totalorder %s353_s24, %s353_s24 }
   0xa   :  { %p360_p6 = por %p359_p5, %p358_p4 }
   0xc   :  { %p361_p7 = pnand %p360_p6, %p354_p3 }
   0xe   :  { %364 = shalt.err (!%p361_p7)
}
   0xf   :  { %s368_s25 = smov 128   ;;  %s369_s26 = smov 8  }
  0x10   :  { %21 = dma.hbm_to_vmem [thread:$0]  %s483_s0, 1024, %s16_s16, [#allocation5], %s368_s25, %s368_s25, %s369_s26  }
  0x11   :  { %365 = dma.done.wait [#allocation5], 1024  }
  0x12   :  { %366 = vsyncadd [#allocation5], 4294966272  ;;  %v370_v0 = vmov 0   ;;  %vm37_vm0 = vcmask 3072   ;;  %v371_v1 = vmov 0.0   ;;  %vm156_vm1 = vcmask 7168  }
  0x13   :  { %340 = vset.pattern.permute.xlu1 %v370_v0  ;;  %339 = vset.pattern.permute.xlu0 %v370_v0  ;;  %38 = vst.msk [vmem:[#allocation3] sm:$0xf] %vm37_vm0, %v371_v1  ;;  %v49_v2 = vld [vmem:[%s484_s1 + $0x10] sm:$0xff]  ;;  %v47_v3 = vld [vmem:[%s484_s1] sm:$0xff]  ;;  %v50_v4 = vld [vmem:[%s484_s1 + $0x18] sm:$0xff]  ;;  %vm145_vm2 = vcmask 1041409  }
  0x14   :  { %68 = vperm.xlu1 %340, %v49_v2   ;;  %v166_v5 = vsel %vm156_vm1, %v49_v2, 0.0  ;;  %58 = vperm.xlu0 %339, %v47_v3   ;;  %v157_v6 = vsel %vm156_vm1, %v47_v3, 0.0  ;;  %v167_v7 = vsel %vm156_vm1, %v50_v4, 0.0  ;;  %v48_v8 = vld [vmem:[%s484_s1 + $0x8] sm:$0xff]  ;;  %v51_v10 = vld [vmem:[%s484_s1 + $0x20] sm:$0xff]  ;;  %v54_v15 = vld [vmem:[%s484_s1 + $0x38] sm:$0xff] }
  0x15   :  { %v52_v9 = vld [vmem:[%s484_s1 + $0x28] sm:$0xff]  ;;  %v168_v11 = vadd.f32 %v167_v7, %v166_v5  ;;  %v158_v12 = vsel %vm156_vm1, %v48_v8, 0.0  ;;  %v175_v14 = vsel %vm156_vm1, %v51_v10, 0.0  ;;  %v53_v16 = vld [vmem:[%s484_s1 + $0x30] sm:$0xff]  ;;  %v185_v19 = vsel %vm156_vm1, %v54_v15, 0.0  ;;  %v210_v53 = vld [vmem:[%s485_s2] sm:$0xff] }
  0x16   :  { %v176_v13 = vsel %vm156_vm1, %v52_v9, 0.0  ;;  %v159_v17 = vadd.f32 %v158_v12, %v157_v6  ;;  %v184_v20 = vsel %vm156_vm1, %v53_v16, 0.0  ;;  %vm147_vm3 = vcmask 1042434   ;;  %v211_v54 = vld [vmem:[%s485_s2 + $0x8] sm:$0xff]  ;;  %v212_v56 = vld [vmem:[%s485_s2 + $0x10] sm:$0xff]  ;;  %v213_v57 = vld [vmem:[%s485_s2 + $0x18] sm:$0xff] }
  0x17   :  { %v177_v18 = vadd.f32 %v176_v13, %v175_v14  ;;  %v169_v21 = vrot.slane %v168_v11, 4  ;;  %v186_v22 = vadd.f32 %v185_v19, %v184_v20  ;;  %vm149_vm4 = vcmask 1043459   ;;  %v41_v62 = vld [vmem:[#allocation4 + $0x10] sm:$0xff]  ;;  %v39_v0 = vld [vmem:[#allocation4] sm:$0xff]  ;;  %v42_v2 = vld [vmem:[#allocation4 + $0x18] sm:$0xff] }
  0x18   :  { %73 = vperm.xlu1 %340, %v50_v4   ;;  %63 = vperm.xlu0 %339, %v48_v8   ;;  %v160_v23 = vrot.slane %v159_v17, 4  ;;  %vm35_vm5 = vcmask 257024   ;;  %v327_v55 = vpack.c.bf16 %v211_v54, %v210_v53  ;;  %v372_v58 = vmov 0.0|0.0   ;;  %v40_v3 = vld [vmem:[#allocation4 + $0x8] sm:$0xff] }
  0x19   :  { %v178_v24 = vrot.slane %v177_v18, 4  ;;  %v170_v25 = vadd.f32 %v169_v21, %v168_v11  ;;  %v187_v26 = vrot.slane %v186_v22, 4  ;;  %36 = vst.msk [vmem:[#allocation2] sm:$0xf] %vm35_vm5, %v371_v1  ;;  %326 = vmatprep.subr.bf16.mxu0 %v372_v58  ;;  %vm373_vm6 = vmmov 0  }
  0x1a   :  { %v161_v27 = vadd.f32 %v160_v23, %v159_v17  ;;  %v155_v47 = vld [vmem:[#allocation3] sm:$0xf]  ;;  %323 = vmatprep.mubr.msk.f32.mxu0 %vm373_vm6, %v371_v1  ;;  %328 = vmatpush3.bf16.msra.mxu0 %v327_v55  ;;  %v330_v59 = vpack.c.bf16 %v213_v57, %v212_v56  ;;  %vm104_vm7 = vcmask 261120   ;;  %v44_v1 = vld [vmem:[#allocation4 + $0x28] sm:$0xff] }
  0x1b   :  { %v179_v28 = vadd.f32 %v178_v24, %v177_v18  ;;  %v171_v29 = vrot.slane %v170_v25, 2  ;;  %v188_v30 = vadd.f32 %v187_v26, %v186_v22  ;;  %329 = vmatprep.subr.bf16.mxu0 %v372_v58  ;;  %v46_v23 = vld [vmem:[#allocation4 + $0x38] sm:$0xff]  ;;  %v45_v24 = vld [vmem:[#allocation4 + $0x30] sm:$0xff] }
  0x1c   :  { %v162_v31 = vrot.slane %v161_v27, 2  ;;  %83 = vperm.xlu1 %340, %v52_v9   ;;  %78 = vperm.xlu0 %339, %v51_v10   ;;  %v43_v10 = vld [vmem:[#allocation4 + $0x20] sm:$0xff] }
  0x1d   :  { %v180_v32 = vrot.slane %v179_v28, 2  ;;  %v172_v33 = vadd.f32 %v171_v29, %v170_v25  ;;  %v189_v34 = vrot.slane %v188_v30, 2 }
  0x1e   :  { %v163_v35 = vadd.f32 %v162_v31, %v161_v27  ;;  %331 = vmatpush3.bf16.msra.mxu0 %v330_v59 }
  0x1f   :  { %v181_v36 = vadd.f32 %v180_v32, %v179_v28  ;;  %v173_v37 = vrot.slane %v172_v33, 1  ;;  %v190_v38 = vadd.f32 %v189_v34, %v188_v30 }
  0x20   :  { %v164_v39 = vrot.slane %v163_v35, 1  ;;  %93 = vperm.xlu1 %340, %v54_v15   ;;  %88 = vperm.xlu0 %339, %v53_v16   ;;  %v55_v57 = vld [vmem:[#allocation2] sm:$0xf] }
  0x21   :  { %v182_v40 = vrot.slane %v181_v36, 1  ;;  %v174_v41 = vadd.f32 %v173_v37, %v172_v33  ;;  %v191_v42 = vrot.slane %v190_v38, 1 }
  0x22   :  { %v165_v43 = vadd.f32 %v164_v39, %v163_v35 }
  0x23   :  { %v183_v44 = vadd.f32 %v182_v40, %v181_v36  ;;  %v192_v45 = vadd.f32 %v191_v42, %v190_v38 }
  0x24   :  { %v197_v46 = vsel %vm145_vm2, %v174_v41, %v165_v43 }
  0x25   :  { %v198_v48 = vsel %vm147_vm3, %v183_v44, %v197_v46 }
  0x26   :  { %v199_v49 = vsel %vm149_vm4, %v192_v45, %v198_v48 }
  0x27   :  { %v201_v50 = vadd.f32 %v199_v49, %v155_v47 }
  0x29   :  { %203 = vst.msk [vmem:[#allocation3] sm:$0xf] %vm37_vm0, %v201_v50 }
  0x30   :  { %v207_v51 = vld [vmem:[#allocation3] sm:$0xf] }
  0x31   :  { %v208_v52 = vmax.f32 %v207_v51, 1e-09 }
  0x33   :  { %341 = vrcp.f32 %v208_v52 }
  0x3d   :  { %v342_v60 = vpop.eup %341 }
  0x3e   :  { %290 = vperm.xlu0 %339, %v342_v60  }
  0x93   :  { %v69_v61 = vpop.permute.xlu1 %68  ;;  %v59_v63 = vpop.permute.xlu0 %58 }
  0x94   :  { %v98_v4 = vmul.f32 %v69_v61, %v41_v62  ;;  %v96_v5 = vmul.f32 %v59_v63, %v39_v0 }
  0x96   :  { %v114_v11 = vsel %vm104_vm7, %v98_v4, 0.0  ;;  %v105_v12 = vsel %vm104_vm7, %v96_v5, 0.0 }
  0x97   :  { %v74_v6 = vpop.permute.xlu1 %73  ;;  %v64_v7 = vpop.permute.xlu0 %63 }
  0x98   :  { %v99_v8 = vmul.f32 %v74_v6, %v42_v2  ;;  %v97_v9 = vmul.f32 %v64_v7, %v40_v3  ;;  %v309_v2 = vld [vmem:[%s486_s3] ss:$0 sm:$0xff] }
  0x9a   :  { %v115_v13 = vsel %vm104_vm7, %v99_v8, 0.0  ;;  %v106_v14 = vsel %vm104_vm7, %v97_v9, 0.0 }
  0x9b   :  { %v116_v15 = vadd.f32 %v115_v13, %v114_v11  ;;  %v107_v16 = vadd.f32 %v106_v14, %v105_v12  ;;  %v84_v17 = vpop.permute.xlu1 %83  ;;  %v79_v18 = vpop.permute.xlu0 %78 }
  0x9c   :  { %v101_v19 = vmul.f32 %v84_v17, %v44_v1  ;;  %v100_v20 = vmul.f32 %v79_v18, %v43_v10 }
  0x9d   :  { %v117_v21 = vrot.slane %v116_v15, 4  ;;  %v108_v22 = vrot.slane %v107_v16, 4 }
  0x9e   :  { %v124_v25 = vsel %vm104_vm7, %v101_v19, 0.0  ;;  %v123_v26 = vsel %vm104_vm7, %v100_v20, 0.0 }
  0x9f   :  { %v118_v27 = vadd.f32 %v117_v21, %v116_v15  ;;  %v109_v28 = vadd.f32 %v108_v22, %v107_v16  ;;  %v125_v29 = vadd.f32 %v124_v25, %v123_v26  ;;  %v94_v30 = vpop.permute.xlu1 %93  ;;  %v89_v31 = vpop.permute.xlu0 %88 }
  0xa0   :  { %v103_v32 = vmul.f32 %v94_v30, %v46_v23  ;;  %v102_v33 = vmul.f32 %v89_v31, %v45_v24 }
  0xa1   :  { %v119_v34 = vrot.slane %v118_v27, 2  ;;  %v110_v35 = vrot.slane %v109_v28, 2  ;;  %v126_v36 = vrot.slane %v125_v29, 4 }
  0xa2   :  { %v133_v37 = vsel %vm104_vm7, %v103_v32, 0.0  ;;  %v132_v38 = vsel %vm104_vm7, %v102_v33, 0.0 }
  0xa3   :  { %v120_v39 = vadd.f32 %v119_v34, %v118_v27  ;;  %v111_v40 = vadd.f32 %v110_v35, %v109_v28  ;;  %v127_v41 = vadd.f32 %v126_v36, %v125_v29  ;;  %v134_v42 = vadd.f32 %v133_v37, %v132_v38 }
  0xa5   :  { %v128_v43 = vrot.slane %v127_v41, 2  ;;  %v135_v44 = vrot.slane %v134_v42, 4  ;;  %v121_v45 = vrot.slane %v120_v39, 1  ;;  %v112_v46 = vrot.slane %v111_v40, 1 }
  0xa7   :  { %v129_v47 = vadd.f32 %v128_v43, %v127_v41  ;;  %v136_v48 = vadd.f32 %v135_v44, %v134_v42  ;;  %v122_v51 = vadd.f32 %v121_v45, %v120_v39  ;;  %v113_v52 = vadd.f32 %v112_v46, %v111_v40 }
  0xa9   :  { %v130_v49 = vrot.slane %v129_v47, 1  ;;  %v137_v50 = vrot.slane %v136_v48, 2  ;;  %v146_v56 = vsel %vm145_vm2, %v122_v51, %v113_v52 }
  0xab   :  { %v138_v53 = vadd.f32 %v137_v50, %v136_v48  ;;  %v131_v54 = vadd.f32 %v130_v49, %v129_v47 }
  0xad   :  { %v139_v55 = vrot.slane %v138_v53, 1  ;;  %v148_v59 = vsel %vm147_vm3, %v131_v54, %v146_v56 }
  0xaf   :  { %v140_v58 = vadd.f32 %v139_v55, %v138_v53 }
  0xb1   :  { %v150_v60 = vsel %vm149_vm4, %v140_v58, %v148_v59 }
  0xb2   :  { %v152_v61 = vadd.f32 %v150_v60, %v55_v57 }
  0xb4   :  { %154 = vst.msk [vmem:[#allocation2] sm:$0xf] %vm35_vm5, %v152_v61 }
  0xbb   :  { %v209_v62 = vld [vmem:[#allocation2] sm:$0xf] }
  0xbc   :  { %324 = vmatmul.mubr.msk.f32.vlgmr.msra.gmra.mrb[0].mxu0 %vm104_vm7, %v209_v62 }
  0xbd   :  { %v291_v63 = vpop.permute.xlu0 %290 }
 0x18f   :  { %v283_v0 = vpop.f32.mrb[0].mxu0 }
 0x190   :  { %v293_v3 = vmul.f32 %v291_v63, %v283_v0  ;;  %v325_v4 = vpop.f32.mrb[1].mxu0 }
 0x192   :  { %v301_v5 = vadd.f32 %v309_v2, %v293_v3 }
 0x194   :  { %302 = vst [vmem:[%s487_s4] sm:$0xf] %v301_v5 }
 0x195   :  { %307 = vsyncpa [#allocation5], 1 }

// kernel: nli_forward.2
= control target key start
LH: loop header
LB: loop body
LE: loop exit
PB: predicated region body
PF: predicated region fallthrough
CT: control target
= control target key end

     0   :  { %vm67_vm0 = vcmask 7168   ;;  %v259_v2 = vmov 0   ;;  %s337_s0 = inlined_call_operand.vmem [shape: f32[2,8,32], index: 0, kind: input, shape index: {}]   ;;  %s338_s1 = inlined_call_operand.vmem [shape: f32[2,8,1], index: 1, kind: input, shape index: {}]   ;;  %s339_s2 = inlined_call_operand.vmem [shape: f32[32,128], index: 2, kind: input, shape index: {}]   ;;  %s340_s3 = inlined_call_operand.vmem [shape: f32[1,128], index: 3, kind: input, shape index: {}]   ;;  %s341_s4 = inlined_call_operand.hbm [shape: f32[2,128], index: 4, kind: output, shape index: {}]  }
   0x1   :  { %v28_v0 = vld [vmem:[%s338_s1] sm:$0xff]  ;;  %v29_v1 = vld [vmem:[%s338_s1 + $0x8] sm:$0xff]  ;;  %231 = vset.pattern.permute.xlu0 %v259_v2  ;;  %232 = vset.pattern.permute.xlu1 %v259_v2 }
   0x2   :  { %v68_v3 = vsel %vm67_vm0, %v28_v0, 0.0  ;;  %v75_v4 = vsel %vm67_vm0, %v29_v1, 0.0 }
   0x3   :  { %9 = vsyncpa [#allocation5], 0  ;;  %33 = vperm.xlu0 %231, %v28_v0   ;;  %v69_v5 = vrot.slane %v68_v3, 4  ;;  %v76_v6 = vrot.slane %v75_v4, 4  ;;  %vm22_vm1 = vcmask 254976   ;;  %v260_v11 = vmov 0.0  }
   0x4   :  { %23 = vst.msk [vmem:[#allocation2] sm:$0x3] %vm22_vm1, %v260_v11  ;;  %v95_v16 = vld [vmem:[%s339_s2] sm:$0xff]  ;;  %v96_v17 = vld [vmem:[%s339_s2 + $0x8] sm:$0xff]  ;;  %v97_v18 = vld [vmem:[%s339_s2 + $0x10] sm:$0xff]  ;;  %vm24_vm2 = vcmask 1024  }
   0x5   :  { %v70_v7 = vadd.f32 %v69_v5, %v68_v3  ;;  %v77_v8 = vadd.f32 %v76_v6, %v75_v4  ;;  %v261_v19 = vmov 0.0|0.0   ;;  %v221_v20 = vpack.c.bf16 %v96_v17, %v95_v16  ;;  %v98_v21 = vld [vmem:[%s339_s2 + $0x18] sm:$0xff]  ;;  %25 = vst.msk [vmem:[#allocation3] sm:$0x3] %vm24_vm2, %v260_v11  ;;  %v26_v31 = vld [vmem:[%s337_s0] sm:$0xff]  ;;  %v27_v34 = vld [vmem:[%s337_s0 + $0x8] sm:$0xff] }
   0x6   :  { %220 = vmatprep.subr.bf16.mxu0 %v261_v19  ;;  %v224_v24 = vpack.c.bf16 %v98_v21, %v97_v18  ;;  %vm262_vm3 = vmmov 0   ;;  %vm60_vm4 = vcmask 1041409   ;;  %vm43_vm5 = vcmask 261120   ;;  %v203_v57 = vld [vmem:[%s340_s3] ss:$0 sm:$0xff]  ;;  %s263_s30 = smov [#allocation4]  }
   0x7   :  { %38 = vperm.xlu0 %231, %v29_v1   ;;  %v71_v9 = vrot.slane %v70_v7, 2  ;;  %v78_v10 = vrot.slane %v77_v8, 2  ;;  %222 = vmatpush3.bf16.msra.mxu0 %v221_v20  ;;  %s194_s5 = sshll.u32 %s263_s30, 4  ;;  %s195_s5 = int_to_ptr.vmem [resolvable:$true] %s194_s5 }
   0x8   :  { %223 = vmatprep.subr.bf16.mxu0 %v261_v19  ;;  %217 = vmatprep.mubr.msk.f32.mxu0 %vm262_vm3, %v260_v11  ;;  %s235_s6 = scalar_lea.vmem %s195_s5, 32  ;;  %p240_p1 = scmp.lt.s32.totalorder %s195_s5, %s195_s5 }
   0x9   :  { %v72_v12 = vadd.f32 %v71_v9, %v70_v7  ;;  %v79_v13 = vadd.f32 %v78_v10, %v77_v8  ;;  %p236_p0 = scmp.ne.s32.totalorder %s195_s5, %s235_s6  ;;  %p241_p2 = scmp.lt.s32.totalorder %s235_s6, %s235_s6 }
   0xb   :  { %v73_v14 = vrot.slane %v72_v12, 1  ;;  %v80_v15 = vrot.slane %v79_v13, 1  ;;  %225 = vmatpush3.bf16.msra.mxu0 %v224_v24  ;;  %v30_v51 = vld [vmem:[#allocation2] sm:$0x3]  ;;  %p242_p3 = por %p241_p2, %p240_p1 }
   0xc   :  { %v66_v26 = vld [vmem:[#allocation3] sm:$0x3] }
   0xd   :  { %v74_v22 = vadd.f32 %v73_v14, %v72_v12  ;;  %v81_v23 = vadd.f32 %v80_v15, %v79_v13  ;;  %p243_p4 = pnand %p242_p3, %p236_p0 }
   0xf   :  { %v84_v25 = vsel %vm60_vm4, %v81_v23, %v74_v22 }
  0x10   :  { %v86_v27 = vadd.f32 %v84_v25, %v66_v26 }
  0x12   :  { %88 = vst.msk [vmem:[#allocation3] sm:$0x3] %vm24_vm2, %v86_v27 }
  0x19   :  { %v92_v28 = vld [vmem:[#allocation3] sm:$0x3] }
  0x1a   :  { %v93_v29 = vmax.f32 %v92_v28, 1e-09 }
  0x1c   :  { %233 = vrcp.f32 %v93_v29 }
  0x26   :  { %v234_v30 = vpop.eup %233 }
  0x27   :  { %175 = vperm.xlu1 %232, %v234_v30  }
  0x82   :  { %v34_v32 = vpop.permute.xlu0 %33 }
  0x83   :  { %v41_v33 = vmul.f32 %v34_v32, %v26_v31 }
  0x85   :  { %v44_v35 = vsel %vm43_vm5, %v41_v33, 0.0 }
  0x86   :  { %v45_v36 = vrot.slane %v44_v35, 4  ;;  %v39_v37 = vpop.permute.xlu0 %38 }
  0x87   :  { %v42_v38 = vmul.f32 %v39_v37, %v27_v34 }
  0x88   :  { %v46_v39 = vadd.f32 %v45_v36, %v44_v35 }
  0x89   :  { %v51_v40 = vsel %vm43_vm5, %v42_v38, 0.0 }
  0x8a   :  { %v47_v41 = vrot.slane %v46_v39, 2  ;;  %v52_v42 = vrot.slane %v51_v40, 4 }
  0x8c   :  { %v48_v43 = vadd.f32 %v47_v41, %v46_v39  ;;  %v53_v44 = vadd.f32 %v52_v42, %v51_v40 }
  0x8e   :  { %v54_v45 = vrot.slane %v53_v44, 2  ;;  %v49_v46 = vrot.slane %v48_v43, 1 }
  0x90   :  { %v55_v47 = vadd.f32 %v54_v45, %v53_v44  ;;  %v50_v49 = vadd.f32 %v49_v46, %v48_v43 }
  0x92   :  { %v56_v48 = vrot.slane %v55_v47, 1 }
  0x94   :  { %v57_v50 = vadd.f32 %v56_v48, %v55_v47 }
  0x96   :  { %v61_v52 = vsel %vm60_vm4, %v57_v50, %v50_v49 }
  0x97   :  { %v63_v53 = vadd.f32 %v61_v52, %v30_v51 }
  0x99   :  { %65 = vst.msk [vmem:[#allocation2] sm:$0x3] %vm22_vm1, %v63_v53 }
  0xa0   :  { %v94_v54 = vld [vmem:[#allocation2] sm:$0x3] }
  0xa1   :  { %218 = vmatmul.mubr.msk.f32.vlgmr.msra.gmra.mrb[0].mxu0 %vm43_vm5, %v94_v54 }
  0xa6   :  { %v176_v55 = vpop.permute.xlu1 %175 }
 0x174   :  { %v168_v56 = vpop.f32.mrb[0].mxu0 }
 0x175   :  { %v178_v58 = vmul.f32 %v176_v55, %v168_v56  ;;  %v219_v59 = vpop.f32.mrb[1].mxu0 }
 0x177   :  { %v186_v60 = vadd.f32 %v203_v57, %v178_v58 }
 0x179   :  { %187 = vst [vmem:[#allocation4] sm:$0x3] %v186_v60 }
 0x17a   :  { %246 = shalt.err (!%p243_p4)
}
 0x17b   :  { %s247_s9 = scalar_lea.hbm %s341_s4, 32 }
 0x17c   :  { %p248_p5 = scmp.ne.s32.totalorder %s341_s4, %s247_s9  ;;  %p251_p6 = scmp.lt.u32.totalorder %s247_s9, %s341_s4 }
 0x17e   :  { %p253_p7 = pnand %p251_p6, %p248_p5 }
 0x180   :  { %256 = shalt.err (!%p253_p7)
}
 0x181   :  { %197 = dma.vmem_to_hbm [thread:$0]  %s195_s5, 32, %s341_s4, [#allocation5]  }
 0x182   :  { %257 = dma.done.wait [#allocation5], 32  }
 0x183   :  { %258 = vsyncadd [#allocation5], 4294967264 }
 0x184   :  { %201 = vsyncpa [#allocation5], 1 }

</bundles_post_ra>
